<compile_context>
chip_gen: v6e
topology: v6e:2x2x1
jax: 0.10.0
libtpu: 0.0.40
codegen_flags: <defaults>
</compile_context>

<pallas_src>
import jax
import jax.numpy as jnp
from jax.experimental import pallas as pl
from jax.experimental.pallas import tpu as pltpu

LAYER_SIZES = [5, 100, 200, 100, 20, 5, 1]   # matches nn.Sequential in FeedForwardNN
N_LAYERS = len(LAYER_SIZES) - 1
PAD = 256        # slab lane / row padding (covers the widest layer, 200)
K0 = 16          # bf16-tile-aligned padded feature width for the first layer
MAX_TB = 512     # batch tile: a few MiB of f32 intermediates -> safe on v7x VMEM


def _round_up(n, m):
    return (n + m - 1) // m * m


# Per-layer tile sizes actually fed to the MXU:
#   n[l] : output lanes, out-dim rounded up to a 128-lane multiple
#   k[l] : contraction rows = previous layer's padded width (16 for the input)
_N = [max(128, _round_up(d, 128)) for d in LAYER_SIZES[1:]]   # [128,256,128,128,128,128]
_K = [K0] + _N[:-1]                                           # [ 16,128,256,128,128,128]
OUT_LANES = _N[-1]                                            # 128 (lane-dense output)


def _mlp_kernel(x_ref, w_ref, b_ref, o_ref):
    """Fused 6-layer MLP on one (TB, K0) batch tile.

    x_ref: (TB, K0)             f32  -- input, zero-padded 5 -> K0 features
    w_ref: (6, PAD, PAD)        bf16 -- zero-padded weights, W[l] laid out (in, out)
    b_ref: (6, 1, PAD)          f32  -- zero-padded biases
    o_ref: (TB, OUT_LANES)      f32  -- lane 0 is the real output, lanes 1.. are 0
    """
    def layer(h, idx, k, n, relu):
        w = w_ref[idx, :k, :n]                                   # bf16 (k, n) aligned view
        y = jnp.dot(h.astype(jnp.bfloat16), w,
                    preferred_element_type=jnp.float32)          # MXU, f32 acc
        y = y + b_ref[idx, :, :n]                                # f32 VPU
        return jnp.maximum(y, 0.0) if relu else y

    h = x_ref[...].astype(jnp.float32)                           # (TB, K0)
    for idx in range(N_LAYERS):
        # Padded weight rows/cols and bias lanes are exactly zero, so padded
        # lanes stay exactly 0 through every ReLU -> math matches the reference
        # (up to bf16 input rounding).
        h = layer(h, idx, _K[idx], _N[idx], relu=(idx < N_LAYERS - 1))
    o_ref[...] = h.astype(o_ref.dtype)                           # full-vreg stores


def pack_params(params):
    """Pack per-layer (W[in,out], b[1,out]) into zero-padded slabs."""
    w_blocks, b_blocks = [], []
    for w, b in params:
        wp = jnp.zeros((PAD, PAD), jnp.bfloat16)
        wp = wp.at[: w.shape[0], : w.shape[1]].set(w.astype(jnp.bfloat16))
        bp = jnp.zeros((1, PAD), jnp.float32)
        bp = bp.at[:, : b.shape[1]].set(b.astype(jnp.float32))
        w_blocks.append(wp)
        b_blocks.append(bp)
    return jnp.stack(w_blocks), jnp.stack(b_blocks)


@jax.jit
def feedforward_nn(x, w_slab, b_slab):
    """x: (B, 5) f32; slabs from pack_params(). Returns (B, 1) f32."""
    batch = x.shape[0]
    tb = min(MAX_TB, _round_up(batch, 8))
    b_pad = _round_up(batch, tb)

    # Pad batch to a tile multiple and features 5 -> K0 (extra rows/lanes zero;
    # padded output rows are sliced off below).
    xp = jnp.zeros((b_pad, K0), jnp.float32)
    xp = xp.at[:batch, : x.shape[1]].set(x.astype(jnp.float32))

    flops = 2 * b_pad * sum(LAYER_SIZES[i] * LAYER_SIZES[i + 1]
                            for i in range(N_LAYERS))
    bytes_accessed = (w_slab.size * w_slab.dtype.itemsize
                      + b_slab.size * b_slab.dtype.itemsize
                      + b_pad * (K0 + OUT_LANES) * 4)

    # TODO(synk): for huge batches the 128-lane-wide output write dominates HBM
    # traffic; an in-kernel transpose to a (1, tb) lane-dense row would keep
    # lane-dense stores at 1/128th of the writeback bytes.
    out = pl.pallas_call(
        _mlp_kernel,
        out_shape=jax.ShapeDtypeStruct((b_pad, OUT_LANES), jnp.float32),
        grid=(b_pad // tb,),
        in_specs=[
            pl.BlockSpec((tb, K0), lambda i: (i, 0)),                 # x tile
            pl.BlockSpec((N_LAYERS, PAD, PAD), lambda i: (0, 0, 0)),  # weights (resident)
            pl.BlockSpec((N_LAYERS, 1, PAD), lambda i: (0, 0, 0)),    # biases  (resident)
        ],
        out_specs=pl.BlockSpec((tb, OUT_LANES), lambda i: (i, 0)),
        compiler_params=pltpu.CompilerParams(
            dimension_semantics=("parallel",),
            vmem_limit_bytes=32 * 1024 * 1024,
        ),
        cost_estimate=pl.CostEstimate(
            flops=flops, transcendentals=0, bytes_accessed=bytes_accessed),
    )(xp, w_slab, b_slab)
    return out[:batch, :1]


def init_params(key):
    """Deterministic init mimicking PyTorch Linear default (uniform +/- 1/sqrt(fan_in))."""
    params = []
    for i in range(N_LAYERS):
        fan_in, fan_out = LAYER_SIZES[i], LAYER_SIZES[i + 1]
        key, kw, kb = jax.random.split(key, 3)
        bound = 1.0 / (fan_in ** 0.5)
        w = jax.random.uniform(kw, (fan_in, fan_out), jnp.float32, -bound, bound)
        b = jax.random.uniform(kb, (1, fan_out), jnp.float32, -bound, bound)
        params.append((w, b))
    return params


def reference_forward(x, params, mxu_dtype=jnp.float32):
    """Pure-JAX reference. mxu_dtype=bfloat16 mimics the kernel's MXU numerics."""
    h = x.astype(jnp.float32)
    for i, (w, b) in enumerate(params):
        h = jnp.dot(h.astype(mxu_dtype), w.astype(mxu_dtype),
                    preferred_element_type=jnp.float32) + b
        if i < N_LAYERS - 1:
            h = jnp.maximum(h, 0.0)
    return h


if __name__ == "__main__":
    key = jax.random.PRNGKey(0)
    key, kx = jax.random.split(key)

    batch, input_size = 8, LAYER_SIZES[0]
    x = jax.random.normal(kx, (batch, input_size), jnp.float32)

    params = init_params(key)
    w_slab, b_slab = pack_params(params)

    out = jax.block_until_ready(feedforward_nn(x, w_slab, b_slab))

    ref_bf16 = reference_forward(x, params, mxu_dtype=jnp.bfloat16)  # kernel numerics
    ref_f32 = reference_forward(x, params, mxu_dtype=jnp.float32)    # exact PyTorch math

    assert out.shape == (batch, 1), out.shape
    assert jnp.allclose(out, ref_bf16, atol=1e-4, rtol=1e-4), (out, ref_bf16)
    assert jnp.allclose(out, ref_f32, atol=5e-2, rtol=5e-2), (out, ref_f32)

    print("KERNEL_OK")
</pallas_src>

<mosaic_0001>
module attributes {stable_mosaic.version = 11 : i64} {
  func.func @_mlp_kernel(%arg0: i32, %arg1: memref<8x16xf32, #tpu.memory_space<vmem>>, %arg2: memref<6x256x256xbf16, #tpu.memory_space<vmem>>, %arg3: memref<6x1x256xf32, #tpu.memory_space<vmem>>, %arg4: memref<8x128xf32, #tpu.memory_space<vmem>>) attributes {dimension_semantics = [#tpu.dimension_semantics<parallel>], iteration_bounds = array<i64: 1>, scalar_prefetch = 0 : i64, scratch_operands = 0 : i64, tpu.core_type = #tpu.core_type<tc>, window_params = [{transform_indices = @transform_0, window_bounds = array<i64: 8, 16>}, {pipeline_mode = #tpu.pipeline_mode<synchronous>, transform_indices = @transform_1, window_bounds = array<i64: 6, 256, 256>}, {pipeline_mode = #tpu.pipeline_mode<synchronous>, transform_indices = @transform_2, window_bounds = array<i64: 6, 1, 256>}, {transform_indices = @transform_3, window_bounds = array<i64: 8, 128>}]} {
    %c0 = arith.constant 0 : index
    %c0_0 = arith.constant 0 : index
    %0 = vector.load %arg1[%c0, %c0_0] : memref<8x16xf32, #tpu.memory_space<vmem>>, vector<8x16xf32>
    %c0_1 = arith.constant 0 : index
    %c0_2 = arith.constant 0 : index
    %c0_3 = arith.constant 0 : index
    %1 = vector.load %arg2[%c0_1, %c0_2, %c0_3] : memref<6x256x256xbf16, #tpu.memory_space<vmem>>, vector<1x16x128xbf16>
    %2 = vector.shape_cast %1 : vector<1x16x128xbf16> to vector<16x128xbf16>
    %3 = arith.truncf %0 : vector<8x16xf32> to vector<8x16xbf16>
    %cst = arith.constant dense<0.000000e+00> : vector<8x128xf32>
    %4 = tpu.matmul %3, %2, %cst {dimension_numbers = #tpu.dot_dimension_numbers<[1], [0], [0], [1], [0, 0, 1, 1], [], []>} : vector<8x16xbf16>, vector<16x128xbf16>, vector<8x128xf32> -> vector<8x128xf32>
    %c0_4 = arith.constant 0 : index
    %c0_5 = arith.constant 0 : index
    %c0_6 = arith.constant 0 : index
    %5 = vector.load %arg3[%c0_4, %c0_5, %c0_6] : memref<6x1x256xf32, #tpu.memory_space<vmem>>, vector<1x1x128xf32>
    %6 = vector.shape_cast %5 : vector<1x1x128xf32> to vector<1x128xf32>
    %7 = vector.broadcast %6 : vector<1x128xf32> to vector<8x128xf32>
    %8 = arith.addf %4, %7 : vector<8x128xf32>
    %cst_7 = arith.constant 0.000000e+00 : f32
    %9 = vector.broadcast %cst_7 : f32 to vector<8x128xf32>
    %10 = arith.maximumf %8, %9 : vector<8x128xf32>
    %c1 = arith.constant 1 : index
    %c0_8 = arith.constant 0 : index
    %c0_9 = arith.constant 0 : index
    %11 = vector.load %arg2[%c1, %c0_8, %c0_9] : memref<6x256x256xbf16, #tpu.memory_space<vmem>>, vector<1x128x256xbf16>
    %12 = vector.shape_cast %11 : vector<1x128x256xbf16> to vector<128x256xbf16>
    %13 = arith.truncf %10 : vector<8x128xf32> to vector<8x128xbf16>
    %cst_10 = arith.constant dense<0.000000e+00> : vector<8x256xf32>
    %14 = tpu.matmul %13, %12, %cst_10 {dimension_numbers = #tpu.dot_dimension_numbers<[1], [0], [0], [1], [0, 0, 1, 1], [], []>} : vector<8x128xbf16>, vector<128x256xbf16>, vector<8x256xf32> -> vector<8x256xf32>
    %c1_11 = arith.constant 1 : index
    %c0_12 = arith.constant 0 : index
    %c0_13 = arith.constant 0 : index
    %15 = vector.load %arg3[%c1_11, %c0_12, %c0_13] : memref<6x1x256xf32, #tpu.memory_space<vmem>>, vector<1x1x256xf32>
    %16 = vector.shape_cast %15 : vector<1x1x256xf32> to vector<1x256xf32>
    %17 = vector.broadcast %16 : vector<1x256xf32> to vector<8x256xf32>
    %18 = arith.addf %14, %17 : vector<8x256xf32>
    %cst_14 = arith.constant 0.000000e+00 : f32
    %19 = vector.broadcast %cst_14 : f32 to vector<8x256xf32>
    %20 = arith.maximumf %18, %19 : vector<8x256xf32>
    %c2 = arith.constant 2 : index
    %c0_15 = arith.constant 0 : index
    %c0_16 = arith.constant 0 : index
    %21 = vector.load %arg2[%c2, %c0_15, %c0_16] : memref<6x256x256xbf16, #tpu.memory_space<vmem>>, vector<1x256x128xbf16>
    %22 = vector.shape_cast %21 : vector<1x256x128xbf16> to vector<256x128xbf16>
    %23 = arith.truncf %20 : vector<8x256xf32> to vector<8x256xbf16>
    %cst_17 = arith.constant dense<0.000000e+00> : vector<8x128xf32>
    %24 = tpu.matmul %23, %22, %cst_17 {dimension_numbers = #tpu.dot_dimension_numbers<[1], [0], [0], [1], [0, 0, 1, 1], [], []>} : vector<8x256xbf16>, vector<256x128xbf16>, vector<8x128xf32> -> vector<8x128xf32>
    %c2_18 = arith.constant 2 : index
    %c0_19 = arith.constant 0 : index
    %c0_20 = arith.constant 0 : index
    %25 = vector.load %arg3[%c2_18, %c0_19, %c0_20] : memref<6x1x256xf32, #tpu.memory_space<vmem>>, vector<1x1x128xf32>
    %26 = vector.shape_cast %25 : vector<1x1x128xf32> to vector<1x128xf32>
    %27 = vector.broadcast %26 : vector<1x128xf32> to vector<8x128xf32>
    %28 = arith.addf %24, %27 : vector<8x128xf32>
    %cst_21 = arith.constant 0.000000e+00 : f32
    %29 = vector.broadcast %cst_21 : f32 to vector<8x128xf32>
    %30 = arith.maximumf %28, %29 : vector<8x128xf32>
    %c3 = arith.constant 3 : index
    %c0_22 = arith.constant 0 : index
    %c0_23 = arith.constant 0 : index
    %31 = vector.load %arg2[%c3, %c0_22, %c0_23] : memref<6x256x256xbf16, #tpu.memory_space<vmem>>, vector<1x128x128xbf16>
    %32 = vector.shape_cast %31 : vector<1x128x128xbf16> to vector<128x128xbf16>
    %33 = arith.truncf %30 : vector<8x128xf32> to vector<8x128xbf16>
    %cst_24 = arith.constant dense<0.000000e+00> : vector<8x128xf32>
    %34 = tpu.matmul %33, %32, %cst_24 {dimension_numbers = #tpu.dot_dimension_numbers<[1], [0], [0], [1], [0, 0, 1, 1], [], []>} : vector<8x128xbf16>, vector<128x128xbf16>, vector<8x128xf32> -> vector<8x128xf32>
    %c3_25 = arith.constant 3 : index
    %c0_26 = arith.constant 0 : index
    %c0_27 = arith.constant 0 : index
    %35 = vector.load %arg3[%c3_25, %c0_26, %c0_27] : memref<6x1x256xf32, #tpu.memory_space<vmem>>, vector<1x1x128xf32>
    %36 = vector.shape_cast %35 : vector<1x1x128xf32> to vector<1x128xf32>
    %37 = vector.broadcast %36 : vector<1x128xf32> to vector<8x128xf32>
    %38 = arith.addf %34, %37 : vector<8x128xf32>
    %cst_28 = arith.constant 0.000000e+00 : f32
    %39 = vector.broadcast %cst_28 : f32 to vector<8x128xf32>
    %40 = arith.maximumf %38, %39 : vector<8x128xf32>
    %c4 = arith.constant 4 : index
    %c0_29 = arith.constant 0 : index
    %c0_30 = arith.constant 0 : index
    %41 = vector.load %arg2[%c4, %c0_29, %c0_30] : memref<6x256x256xbf16, #tpu.memory_space<vmem>>, vector<1x128x128xbf16>
    %42 = vector.shape_cast %41 : vector<1x128x128xbf16> to vector<128x128xbf16>
    %43 = arith.truncf %40 : vector<8x128xf32> to vector<8x128xbf16>
    %cst_31 = arith.constant dense<0.000000e+00> : vector<8x128xf32>
    %44 = tpu.matmul %43, %42, %cst_31 {dimension_numbers = #tpu.dot_dimension_numbers<[1], [0], [0], [1], [0, 0, 1, 1], [], []>} : vector<8x128xbf16>, vector<128x128xbf16>, vector<8x128xf32> -> vector<8x128xf32>
    %c4_32 = arith.constant 4 : index
    %c0_33 = arith.constant 0 : index
    %c0_34 = arith.constant 0 : index
    %45 = vector.load %arg3[%c4_32, %c0_33, %c0_34] : memref<6x1x256xf32, #tpu.memory_space<vmem>>, vector<1x1x128xf32>
    %46 = vector.shape_cast %45 : vector<1x1x128xf32> to vector<1x128xf32>
    %47 = vector.broadcast %46 : vector<1x128xf32> to vector<8x128xf32>
    %48 = arith.addf %44, %47 : vector<8x128xf32>
    %cst_35 = arith.constant 0.000000e+00 : f32
    %49 = vector.broadcast %cst_35 : f32 to vector<8x128xf32>
    %50 = arith.maximumf %48, %49 : vector<8x128xf32>
    %c5 = arith.constant 5 : index
    %c0_36 = arith.constant 0 : index
    %c0_37 = arith.constant 0 : index
    %51 = vector.load %arg2[%c5, %c0_36, %c0_37] : memref<6x256x256xbf16, #tpu.memory_space<vmem>>, vector<1x128x128xbf16>
    %52 = vector.shape_cast %51 : vector<1x128x128xbf16> to vector<128x128xbf16>
    %53 = arith.truncf %50 : vector<8x128xf32> to vector<8x128xbf16>
    %cst_38 = arith.constant dense<0.000000e+00> : vector<8x128xf32>
    %54 = tpu.matmul %53, %52, %cst_38 {dimension_numbers = #tpu.dot_dimension_numbers<[1], [0], [0], [1], [0, 0, 1, 1], [], []>} : vector<8x128xbf16>, vector<128x128xbf16>, vector<8x128xf32> -> vector<8x128xf32>
    %c5_39 = arith.constant 5 : index
    %c0_40 = arith.constant 0 : index
    %c0_41 = arith.constant 0 : index
    %55 = vector.load %arg3[%c5_39, %c0_40, %c0_41] : memref<6x1x256xf32, #tpu.memory_space<vmem>>, vector<1x1x128xf32>
    %56 = vector.shape_cast %55 : vector<1x1x128xf32> to vector<1x128xf32>
    %57 = vector.broadcast %56 : vector<1x128xf32> to vector<8x128xf32>
    %58 = arith.addf %54, %57 : vector<8x128xf32>
    %c0_42 = arith.constant 0 : index
    %c0_43 = arith.constant 0 : index
    %59 = vector.load %arg4[%c0_42, %c0_43] : memref<8x128xf32, #tpu.memory_space<vmem>>, vector<8x128xf32>
    tpu.vector_store %arg4[%c0_42, %c0_43], %58 {strides = array<i32>} : memref<8x128xf32, #tpu.memory_space<vmem>>, vector<8x128xf32>,
    return
  }
  func.func @transform_0(%arg0: i32) -> (i32, i32) {
    %c0_i32 = arith.constant 0 : i32
    %c0_i32_0 = arith.constant 0 : i32
    return %arg0, %c0_i32 : i32, i32
  }
  func.func @transform_1(%arg0: i32) -> (i32, i32, i32) {
    %c0_i32 = arith.constant 0 : i32
    %c0_i32_0 = arith.constant 0 : i32
    %c0_i32_1 = arith.constant 0 : i32
    %c0_i32_2 = arith.constant 0 : i32
    return %c0_i32, %c0_i32_0, %c0_i32_1 : i32, i32, i32
  }
  func.func @transform_2(%arg0: i32) -> (i32, i32, i32) {
    %c0_i32 = arith.constant 0 : i32
    %c0_i32_0 = arith.constant 0 : i32
    %c0_i32_1 = arith.constant 0 : i32
    %c0_i32_2 = arith.constant 0 : i32
    return %c0_i32, %c0_i32_0, %c0_i32_1 : i32, i32, i32
  }
  func.func @transform_3(%arg0: i32) -> (i32, i32) {
    %c0_i32 = arith.constant 0 : i32
    %c0_i32_0 = arith.constant 0 : i32
    return %arg0, %c0_i32 : i32, i32
  }
}

</mosaic_0001>

<bundles_post_ra>
// kernel: feedforward_nn.1
= control target key start
LH: loop header
LB: loop body
LE: loop exit
PB: predicated region body
PF: predicated region fallthrough
CT: control target
= control target key end

     0   :  { %8 = vsyncpa [#allocation3], 0  ;;  %s1053_s12 = smov [#allocation2]   ;;  %s1139_s0 = inlined_call_operand.vmem [shape: f32[8,16], index: 0, kind: input, shape index: {}]   ;;  %s1140_s1 = inlined_call_operand.hbm [shape: bf16[6,256,256], index: 1, kind: input, shape index: {}]   ;;  %s1141_s2 = inlined_call_operand.vmem [shape: f32[6,1,256], index: 2, kind: input, shape index: {}]   ;;  %s1142_s3 = inlined_call_operand.vmem [shape: f32[8,128], index: 3, kind: output, shape index: {}]  }
   0x1   :  { %s16_s13 = sshll.u32 %s1053_s12, 4  ;;  %s17_s13 = int_to_ptr.vmem [resolvable:$true] %s16_s13 }
   0x2   :  { %s1039_s14 = scalar_lea.vmem %s17_s13, 24576  ;;  %p1044_p1 = scmp.lt.s32.totalorder %s17_s13, %s17_s13 }
   0x3   :  { %p1040_p0 = scmp.ne.s32.totalorder %s17_s13, %s1039_s14  ;;  %p1045_p2 = scmp.lt.s32.totalorder %s1039_s14, %s1039_s14 }
   0x5   :  { %p1046_p3 = por %p1045_p2, %p1044_p1 }
   0x7   :  { %p1047_p4 = pnand %p1046_p3, %p1040_p0 }
   0x9   :  { %1050 = shalt.err (!%p1047_p4)
}
   0xa   :  { %s1054_s15 = smov 128   ;;  %s1055_s16 = smov 8  }
   0xb   :  { %22 = dma.hbm_to_vmem [thread:$0]  %s1140_s1, 24576, %s17_s13, [#allocation3], %s1054_s15, %s1054_s15, %s1055_s16  }
   0xc   :  { %1051 = dma.done.wait [#allocation3], 24576  }
   0xd   :  { %1052 = vsyncadd [#allocation3], 4294942720  ;;  %v1056_v0 = vmov 0.0   ;;  %vm1057_vm0 = vmmov 0   ;;  %v966_v1 = vld [vmem:[#allocation2] ss:$8 sps:$4 sm:$0xff]   ;;  %v112_v50 = vlaneseq }
   0xe   :  { %894 = vmatprep.subr.bf16.mxu0 %v1056_v0  ;;  %896 = vmatprep.mubr.msk.bf16.mxu0 %vm1057_vm0, %v1056_v0  ;;  %v29_v2 = vld [vmem:[%s1139_s0] sm:$0xff]  ;;  %vm46_vm1 = vcmask 130048   ;;  %v967_v4 = vld [vmem:[#allocation2 + $0x174] ss:$8 sps:$4 sm:$0xff]   ;;  %v969_v5 = vld [vmem:[#allocation2 + $0x170] ss:$8 sps:$4 sm:$0xff]  }
   0xf   :  { %895 = vmatpush3.bf16.msra.mxu0 %v966_v1  ;;  %v32_v3 = vpack.c.bf16 %v29_v2, %v29_v2  ;;  %v970_v6 = vld [vmem:[#allocation2 + $0x164] ss:$8 sps:$4 sm:$0xff]   ;;  %202 = vmatprep.subr.bf16.mxu1 %v967_v4  ;;  %v972_v7 = vld [vmem:[#allocation2 + $0x160] ss:$8 sps:$4 sm:$0xff]   ;;  %v973_v8 = vld [vmem:[#allocation2 + $0x154] ss:$8 sps:$4 sm:$0xff]  }
  0x10   :  { %203 = vmatpush1.bf16.msra.mxu1 %v969_v5  ;;  %v975_v9 = vld [vmem:[#allocation2 + $0x150] ss:$8 sps:$4 sm:$0xff]   ;;  %v976_v10 = vld [vmem:[#allocation2 + $0x144] ss:$8 sps:$4 sm:$0xff]   ;;  %v978_v11 = vld [vmem:[#allocation2 + $0x140] ss:$8 sps:$4 sm:$0xff]  }
  0x11   :  { %204 = vmatprep.subr.bf16.mxu1 %v970_v6  ;;  %v979_v12 = vld [vmem:[#allocation2 + $0x134] ss:$8 sps:$4 sm:$0xff]   ;;  %v981_v13 = vld [vmem:[#allocation2 + $0x130] ss:$8 sps:$4 sm:$0xff]   ;;  %v982_v14 = vld [vmem:[#allocation2 + $0x124] ss:$8 sps:$4 sm:$0xff]  }
  0x12   :  { %897 = vmatmul.mubr.msk.bf16.vlgmr.msra.gmra.mxu0 %vm46_vm1, %v32_v3  ;;  %v984_v15 = vld [vmem:[#allocation2 + $0x120] ss:$8 sps:$4 sm:$0xff]   ;;  %v985_v16 = vld [vmem:[#allocation2 + $0x114] ss:$8 sps:$4 sm:$0xff]   ;;  %v987_v17 = vld [vmem:[#allocation2 + $0x110] ss:$8 sps:$4 sm:$0xff]  }
  0x13   :  { %v988_v18 = vld [vmem:[#allocation2 + $0x104] ss:$8 sps:$4 sm:$0xff]   ;;  %v990_v19 = vld [vmem:[#allocation2 + $0x100] ss:$8 sps:$4 sm:$0xff]   ;;  %v1058_v20 = vmov 0   ;;  %v113_v51 = vshrl.u32 %v112_v50, 7 }
  0x14   :  { %205 = vmatpush1.bf16.msra.mxu1 %v972_v7  ;;  %234 = vmatprep.mubr.bf16.mxu1 %v1058_v20  ;;  %v991_v21 = vld [vmem:[#allocation2 + $0x2f0] ss:$8 sps:$4 sm:$0xff]   ;;  %v993_v23 = vld [vmem:[#allocation2 + $0x2e0] ss:$8 sps:$4 sm:$0xff]  }
  0x15   :  { %206 = vmatprep.subr.bf16.mxu1 %v973_v8  ;;  %v992_v22 = vld [vmem:[#allocation2 + $0x270] ss:$8 sps:$4 sm:$0xff]   ;;  %845 = vmatprep.subr.bf16.mxu0 %v991_v21  ;;  %v994_v24 = vld [vmem:[#allocation2 + $0x260] ss:$8 sps:$4 sm:$0xff]   ;;  %v114_v52 = vsub.s32 0, %v113_v51  ;;  %v118_v54 = vsub.s32 1, %v113_v51 }
  0x16   :  { %846 = vmatpush3.bf16.msra.mxu0 %v992_v22  ;;  %v995_v25 = vld [vmem:[#allocation2 + $0x2d0] ss:$8 sps:$4 sm:$0xff]   ;;  %v997_v27 = vld [vmem:[#allocation2 + $0x2c0] ss:$8 sps:$4 sm:$0xff]  }
  0x17   :  { %847 = vmatprep.subr.bf16.mxu0 %v993_v23  ;;  %v996_v26 = vld [vmem:[#allocation2 + $0x250] ss:$8 sps:$4 sm:$0xff]   ;;  %v998_v28 = vld [vmem:[#allocation2 + $0x240] ss:$8 sps:$4 sm:$0xff]  }
  0x18   :  { %207 = vmatpush1.bf16.msra.mxu1 %v975_v9  ;;  %v999_v29 = vld [vmem:[#allocation2 + $0x2b0] ss:$8 sps:$4 sm:$0xff]   ;;  %v1001_v31 = vld [vmem:[#allocation2 + $0x2a0] ss:$8 sps:$4 sm:$0xff]  }
  0x19   :  { %208 = vmatprep.subr.bf16.mxu1 %v976_v10  ;;  %v1000_v30 = vld [vmem:[#allocation2 + $0x230] ss:$8 sps:$4 sm:$0xff]   ;;  %v1002_v32 = vld [vmem:[#allocation2 + $0x220] ss:$8 sps:$4 sm:$0xff]  }
  0x1a   :  { %848 = vmatpush3.bf16.msra.mxu0 %v994_v24  ;;  %v775_v33 = vld [vmem:[%s1141_s2] ss:$0 sm:$0xff]  ;;  %v1003_v41 = vld [vmem:[#allocation2 + $0x290] ss:$8 sps:$4 sm:$0xff]   ;;  %v778_v53 = vld [vmem:[%s1141_s2 + $0x2] sm:$0x3] }
  0x1b   :  { %849 = vmatprep.subr.bf16.mxu0 %v995_v25  ;;  %v1004_v42 = vld [vmem:[#allocation2 + $0x210] ss:$8 sps:$4 sm:$0xff]   ;;  %v1005_v43 = vld [vmem:[#allocation2 + $0x280] ss:$8 sps:$4 sm:$0xff]   ;;  %v115_v55 = vrot.slane %v778_v53, %v114_v52  ;;  %v119_v56 = vrot.slane %v778_v53, %v118_v54 }
  0x1c   :  { %209 = vmatpush1.bf16.msra.mxu1 %v978_v11  ;;  %v1006_v44 = vld [vmem:[#allocation2 + $0x200] ss:$8 sps:$4 sm:$0xff]   ;;  %v1007_v45 = vld [vmem:[#allocation2 + $0x370] ss:$8 sps:$4 sm:$0xff]  }
  0x1d   :  { %210 = vmatprep.subr.bf16.mxu1 %v979_v12  ;;  %v1008_v46 = vld [vmem:[#allocation2 + $0x360] ss:$8 sps:$4 sm:$0xff]   ;;  %v1009_v47 = vld [vmem:[#allocation2 + $0x350] ss:$8 sps:$4 sm:$0xff]  }
  0x1e   :  { %850 = vmatpush3.bf16.msra.mxu0 %v996_v26  ;;  %v1010_v48 = vld [vmem:[#allocation2 + $0x340] ss:$8 sps:$4 sm:$0xff]   ;;  %v1011_v49 = vld [vmem:[#allocation2 + $0x330] ss:$8 sps:$4 sm:$0xff]  }
  0x1f   :  { %851 = vmatprep.subr.bf16.mxu0 %v997_v27  ;;  %v1012_v4 = vld [vmem:[#allocation2 + $0x320] ss:$8 sps:$4 sm:$0xff]   ;;  %v1013_v5 = vld [vmem:[#allocation2 + $0x310] ss:$8 sps:$4 sm:$0xff]  }
  0x20   :  { %211 = vmatpush1.bf16.msra.mxu1 %v981_v13  ;;  %v1014_v6 = vld [vmem:[#allocation2 + $0x300] ss:$8 sps:$4 sm:$0xff]   ;;  %v1015_v7 = vld [vmem:[#allocation2 + $0x470] ss:$8 sps:$4 sm:$0xff]  }
  0x21   :  { %212 = vmatprep.subr.bf16.mxu1 %v982_v14  ;;  %v1016_v8 = vld [vmem:[#allocation2 + $0x460] ss:$8 sps:$4 sm:$0xff]   ;;  %v1017_v9 = vld [vmem:[#allocation2 + $0x450] ss:$8 sps:$4 sm:$0xff]   ;;  %v796_v14 = vld [vmem:[%s1141_s2 + $0x4] ss:$0 sm:$0xff] }
  0x22   :  { %852 = vmatpush3.bf16.msra.mxu0 %v998_v28  ;;  %v1018_v10 = vld [vmem:[#allocation2 + $0x440] ss:$8 sps:$4 sm:$0xff]   ;;  %v1019_v11 = vld [vmem:[#allocation2 + $0x430] ss:$8 sps:$4 sm:$0xff]  }
  0x23   :  { %853 = vmatprep.subr.bf16.mxu0 %v999_v29  ;;  %v1020_v12 = vld [vmem:[#allocation2 + $0x420] ss:$8 sps:$4 sm:$0xff]   ;;  %v1021_v22 = vld [vmem:[#allocation2 + $0x410] ss:$8 sps:$4 sm:$0xff]  }
  0x24   :  { %213 = vmatpush1.bf16.msra.mxu1 %v984_v15  ;;  %v1022_v23 = vld [vmem:[#allocation2 + $0x400] ss:$8 sps:$4 sm:$0xff]   ;;  %v1023_v24 = vld [vmem:[#allocation2 + $0x570] ss:$8 sps:$4 sm:$0xff]  }
  0x25   :  { %214 = vmatprep.subr.bf16.mxu1 %v985_v16  ;;  %v1024_v25 = vld [vmem:[#allocation2 + $0x560] ss:$8 sps:$4 sm:$0xff]   ;;  %v1025_v26 = vld [vmem:[#allocation2 + $0x550] ss:$8 sps:$4 sm:$0xff]  }
  0x26   :  { %854 = vmatpush3.bf16.msra.mxu0 %v1000_v30  ;;  %v1026_v27 = vld [vmem:[#allocation2 + $0x540] ss:$8 sps:$4 sm:$0xff]   ;;  %v1027_v28 = vld [vmem:[#allocation2 + $0x530] ss:$8 sps:$4 sm:$0xff]   ;;  %v814_v30 = vld [vmem:[%s1141_s2 + $0x6] ss:$0 sm:$0xff] }
  0x27   :  { %855 = vmatprep.subr.bf16.mxu0 %v1001_v31  ;;  %v1028_v29 = vld [vmem:[#allocation2 + $0x520] ss:$8 sps:$4 sm:$0xff]  }
  0x28   :  { %215 = vmatpush1.bf16.msra.mxu1 %v987_v17 }
  0x29   :  { %216 = vmatprep.subr.bf16.mxu1 %v988_v18 }
  0x2a   :  { %856 = vmatpush3.bf16.msra.mxu0 %v1002_v32 }
  0x2b   :  { %857 = vmatprep.subr.bf16.mxu0 %v1003_v41 }
  0x2c   :  { %217 = vmatpush1.bf16.msra.mxu1 %v990_v19 }
  0x2d   :  { %900 = vmatprep.subr.bf16.mxu1 %v1056_v0 }
  0x2e   :  { %858 = vmatpush3.bf16.msra.mxu0 %v1004_v42 }
  0x2f   :  { %859 = vmatprep.subr.bf16.mxu0 %v1005_v43 }
  0x32   :  { %860 = vmatpush3.bf16.msra.mxu0 %v1006_v44 }
  0x33   :  { %920 = vmatprep.subr.bf16.mxu0 %v1056_v0 }
  0xd2   :  { %v84_v34 = vpop.f32.mrf.mxu0 }
  0xd3   :  { %v85_v35 = vadd.f32 %v775_v33, %v84_v34 }
  0xd4   :  { %v898_v36 = vpop.f32.mrf.mxu0 }
  0xd5   :  { %v90_v37 = vmax.f32 %v85_v35, 0.0 }
  0xd6   :  { %v87_v38 = vpop.f32.mrf.mxu0 }
  0xd7   :  { %v108_v39 = vpack.c.bf16 %v90_v37, %v90_v37  ;;  %v1029_v38 = vld [vmem:[#allocation2 + $0x510] ss:$8 sps:$4 sm:$0xff]  }
  0xd8   :  { %v899_v40 = vpop.f32.mrf.mxu0 }
  0xd9   :  { %235 = vmatmul.mubr.bf16.vlgmr.msra.gmra.mxu1 %v108_v39  ;;  %v1030_v39 = vld [vmem:[#allocation2 + $0x500] ss:$8 sps:$4 sm:$0xff]  }
  0xda   :  { %916 = vmatprep.mubr.msk.bf16.mxu1 %vm1057_vm0, %v1056_v0  ;;  %901 = vmatpush3.bf16.msra.mxu1 %v1007_v45  ;;  %v824_v40 = vld [vmem:[%s1141_s2 + $0x8] ss:$0 sm:$0xff] }
  0xdb   :  { %902 = vmatprep.subr.bf16.mxu1 %v1056_v0 }
  0xde   :  { %903 = vmatpush3.bf16.msra.mxu1 %v1008_v46 }
  0xdf   :  { %904 = vmatprep.subr.bf16.mxu1 %v1056_v0 }
  0xe2   :  { %905 = vmatpush3.bf16.msra.mxu1 %v1009_v47 }
  0xe3   :  { %906 = vmatprep.subr.bf16.mxu1 %v1056_v0 }
  0xe6   :  { %907 = vmatpush3.bf16.msra.mxu1 %v1010_v48  ;;  %v834_v48 = vld [vmem:[%s1141_s2 + $0xa] ss:$0 sm:$0xff] }
  0xe7   :  { %908 = vmatprep.subr.bf16.mxu1 %v1056_v0 }
  0xea   :  { %909 = vmatpush3.bf16.msra.mxu1 %v1011_v49 }
  0xeb   :  { %910 = vmatprep.subr.bf16.mxu1 %v1056_v0 }
  0xee   :  { %911 = vmatpush3.bf16.msra.mxu1 %v1012_v4 }
  0xef   :  { %912 = vmatprep.subr.bf16.mxu1 %v1056_v0 }
  0xf2   :  { %913 = vmatpush3.bf16.msra.mxu1 %v1013_v5 }
  0xf3   :  { %914 = vmatprep.subr.bf16.mxu1 %v1056_v0 }
  0xf6   :  { %915 = vmatpush3.bf16.msra.mxu1 %v1014_v6 }
  0xf7   :  { %940 = vmatprep.subr.bf16.mxu1 %v1056_v0 }
 0x199   :  { %v236_v57 = vpop.f32.mrf.mxu1 }
 0x19a   :  { %v237_v58 = vadd.f32 %v236_v57, %v115_v55 }
 0x19b   :  { %v238_v59 = vpop.f32.mrf.mxu1 }
 0x19c   :  { %v239_v60 = vadd.f32 %v238_v59, %v119_v56  ;;  %v243_v61 = vmax.f32 %v237_v58, 0.0 }
 0x19d   :  { %v240_v62 = vpop.f32.mrf.mxu1 }
 0x19e   :  { %v244_v63 = vmax.f32 %v239_v60, 0.0  ;;  %v278_v3 = vpack.c.bf16 %v243_v61, %v243_v61 }
 0x19f   :  { %v241_v1 = vpop.f32.mrf.mxu1 }
 0x1a0   :  { %v279_v2 = vpack.c.bf16 %v244_v63, %v244_v63 }
 0x1a2   :  { %416 = vmatprep.mubr.bf16.mxu0 %v279_v2 }
 0x1a3   :  { %417 = vmatmul.mubr.bf16.vlgmr.msra.gmra.mxu0 %v278_v3 }
 0x1a4   :  { %936 = vmatprep.mubr.msk.bf16.mxu0 %vm1057_vm0, %v1056_v0  ;;  %921 = vmatpush3.bf16.msra.mxu0 %v1015_v7 }
 0x1a5   :  { %922 = vmatprep.subr.bf16.mxu0 %v1056_v0 }
 0x1a8   :  { %923 = vmatpush3.bf16.msra.mxu0 %v1016_v8 }
 0x1a9   :  { %924 = vmatprep.subr.bf16.mxu0 %v1056_v0 }
 0x1ac   :  { %925 = vmatpush3.bf16.msra.mxu0 %v1017_v9 }
 0x1ad   :  { %926 = vmatprep.subr.bf16.mxu0 %v1056_v0 }
 0x1b0   :  { %927 = vmatpush3.bf16.msra.mxu0 %v1018_v10 }
 0x1b1   :  { %928 = vmatprep.subr.bf16.mxu0 %v1056_v0 }
 0x1b4   :  { %929 = vmatpush3.bf16.msra.mxu0 %v1019_v11 }
 0x1b5   :  { %930 = vmatprep.subr.bf16.mxu0 %v1056_v0 }
 0x1b8   :  { %931 = vmatpush3.bf16.msra.mxu0 %v1020_v12 }
 0x1b9   :  { %932 = vmatprep.subr.bf16.mxu0 %v1056_v0 }
 0x1bc   :  { %933 = vmatpush3.bf16.msra.mxu0 %v1021_v22 }
 0x1bd   :  { %934 = vmatprep.subr.bf16.mxu0 %v1056_v0 }
 0x1c0   :  { %935 = vmatpush3.bf16.msra.mxu0 %v1022_v23 }
 0x263   :  { %v861_v13 = vpop.f32.mrf.mxu0 }
 0x265   :  { %v862_v15 = vpop.f32.mrf.mxu0 }
 0x266   :  { %v863_v16 = vadd.f32 %v862_v15, %v861_v13 }
 0x267   :  { %v864_v17 = vpop.f32.mrf.mxu0 }
 0x268   :  { %v419_v18 = vadd.f32 %v863_v16, %v796_v14 }
 0x269   :  { %v865_v19 = vpop.f32.mrf.mxu0 }
 0x26a   :  { %v424_v20 = vmax.f32 %v419_v18, 0.0 }
 0x26c   :  { %v442_v21 = vpack.c.bf16 %v424_v20, %v424_v20 }
 0x26e   :  { %917 = vmatmul.mubr.bf16.vlgmr.msra.gmra.mxu1 %v442_v21 }
 0x26f   :  { %956 = vmatprep.mubr.msk.bf16.mxu1 %vm1057_vm0, %v1056_v0  ;;  %941 = vmatpush3.bf16.msra.mxu1 %v1023_v24 }
 0x270   :  { %942 = vmatprep.subr.bf16.mxu1 %v1056_v0 }
 0x273   :  { %943 = vmatpush3.bf16.msra.mxu1 %v1024_v25 }
 0x274   :  { %944 = vmatprep.subr.bf16.mxu1 %v1056_v0 }
 0x277   :  { %945 = vmatpush3.bf16.msra.mxu1 %v1025_v26 }
 0x278   :  { %946 = vmatprep.subr.bf16.mxu1 %v1056_v0 }
 0x27b   :  { %947 = vmatpush3.bf16.msra.mxu1 %v1026_v27 }
 0x27c   :  { %948 = vmatprep.subr.bf16.mxu1 %v1056_v0 }
 0x27f   :  { %949 = vmatpush3.bf16.msra.mxu1 %v1027_v28 }
 0x280   :  { %950 = vmatprep.subr.bf16.mxu1 %v1056_v0 }
 0x283   :  { %951 = vmatpush3.bf16.msra.mxu1 %v1028_v29 }
 0x284   :  { %952 = vmatprep.subr.bf16.mxu1 %v1056_v0 }
 0x287   :  { %953 = vmatpush3.bf16.msra.mxu1 %v1029_v38 }
 0x288   :  { %954 = vmatprep.subr.bf16.mxu1 %v1056_v0 }
 0x28b   :  { %955 = vmatpush3.bf16.msra.mxu1 %v1030_v39 }
 0x32e   :  { %v533_v31 = vpop.f32.mrf.mxu1 }
 0x32f   :  { %v534_v32 = vadd.f32 %v814_v30, %v533_v31 }
 0x330   :  { %v918_v33 = vpop.f32.mrf.mxu1 }
 0x331   :  { %v539_v34 = vmax.f32 %v534_v32, 0.0 }
 0x332   :  { %v536_v35 = vpop.f32.mrf.mxu1 }
 0x333   :  { %v557_v36 = vpack.c.bf16 %v539_v34, %v539_v34 }
 0x334   :  { %v919_v37 = vpop.f32.mrf.mxu1 }
 0x335   :  { %937 = vmatmul.mubr.bf16.vlgmr.msra.gmra.mxu0 %v557_v36 }
 0x3f5   :  { %v648_v41 = vpop.f32.mrf.mxu0 }
 0x3f6   :  { %v649_v42 = vadd.f32 %v824_v40, %v648_v41 }
 0x3f7   :  { %v938_v43 = vpop.f32.mrf.mxu0 }
 0x3f8   :  { %v654_v44 = vmax.f32 %v649_v42, 0.0 }
 0x3f9   :  { %v651_v45 = vpop.f32.mrf.mxu0 }
 0x3fa   :  { %v672_v46 = vpack.c.bf16 %v654_v44, %v654_v44 }
 0x3fb   :  { %v939_v47 = vpop.f32.mrf.mxu0 }
 0x3fc   :  { %957 = vmatmul.mubr.bf16.vlgmr.msra.gmra.mxu1 %v672_v46 }
 0x4bc   :  { %v763_v49 = vpop.f32.mrf.mxu1 }
 0x4bd   :  { %v764_v0 = vadd.f32 %v834_v48, %v763_v49 }
 0x4be   :  { %v958_v50 = vpop.f32.mrf.mxu1 }
 0x4bf   :  { %769 = vst [vmem:[%s1142_s3] sm:$0xff] %v764_v0 }
 0x4c0   :  { %v766_v51 = vpop.f32.mrf.mxu1 }
 0x4c2   :  { %v959_v52 = vpop.f32.mrf.mxu1 }
 0x4c3   :  { %774 = vsyncpa [#allocation3], 1 }

</bundles_post_ra>
